<compile_context>
chip_gen: v5e
topology: v5e:2x2
jax: 0.10.0
libtpu: 0.0.40
codegen_flags: <defaults>
</compile_context>

<pallas_src>
import jax
import jax.numpy as jnp
from jax import lax
from jax.experimental import pallas as pl
from jax.experimental.pallas import tpu as pltpu


def _round_up(x, m):
    return ((x + m - 1) // m) * m


def _vmem_limit_bytes():
    """Scoped-VMEM limit sized from the actual chip (fallback: v7x 64 MiB)."""
    cap = None
    try:
        info = pltpu.get_tpu_info()
        cap = getattr(info, "vmem_capacity_bytes", None)
    except Exception:
        cap = None
    if not cap:
        cap = 64 * 1024 * 1024  # conservative: v7x per-TC VMEM
    # 3/4 of physical, capped, never below the old 32 MiB setting.
    return max(32 * 1024 * 1024, min(int(cap) * 3 // 4, 100 * 1024 * 1024))


def _choose_bblk(B, step_bytes_fn, vmem_budget, lq_pad, target_rows=512):
    """Batch-block size: big blocks (amortize ~0.35us/step + DMA ramp), VMEM-fit,
    >=2 grid steps when B>1 (v7x megacore), prefer divisors of B (no batch pad)."""
    bblk = max(1, min(B, max(1, target_rows // max(lq_pad, 1))))
    while bblk > 1 and step_bytes_fn(bblk) > vmem_budget:
        bblk -= 1
    if B > 1:
        bblk = min(bblk, (B + 1) // 2)  # guarantee >= 2 grid steps
    if B % bblk != 0:
        for cand in range(bblk, max(0, bblk // 2), -1):
            if B % cand == 0:
                bblk = cand
                break
    return bblk


def _attn_weights_kernel(q_ref, k_ref, wq_ref, bq_ref, wk_ref, bk_ref,
                         mask_ref, out_ref):
    """One grid step over Bblk batch elements.

    q_ref:  (Bblk, Lq, q_dim)  native dtype      k_ref: (Bblk, Lk, k_dim)
    wq_ref: (q_dim, proj) bf16 (scale folded)    bq_ref: (1, proj) f32 (scaled)
    wk_ref: (k_dim, proj) bf16                   bk_ref: (1, proj) f32
    mask_ref: (Bblk, 1, Lk) f32  precomputed additive mask (0 / -1e9, 0 in pad)
    out_ref:  (Bblk, Lq, Lk) f32
    """
    bblk, lq, qd = q_ref.shape
    _, lk, kd = k_ref.shape
    proj = wq_ref.shape[1]

    # Flatten batch into rows -> one tall MXU matmul per projection.
    # (Layout-preserving merge: lq % 8 == 0, lk % 8 == 0.)  bf16 operands,
    # fp32 accumulation; bias add in fp32.
    q2 = q_ref[...].reshape(bblk * lq, qd).astype(jnp.bfloat16)
    k2 = k_ref[...].reshape(bblk * lk, kd).astype(jnp.bfloat16)
    Q = jnp.dot(q2, wq_ref[...], preferred_element_type=jnp.float32) + bq_ref[...]
    K = jnp.dot(k2, wk_ref[...], preferred_element_type=jnp.float32) + bk_ref[...]

    # Single batched contraction over the projection dim: contract LAST dims,
    # batch over the leading dim -> no explicit K transpose, one bf16 cast each.
    Qb = Q.astype(jnp.bfloat16).reshape(bblk, lq, proj)
    Kb = K.astype(jnp.bfloat16).reshape(bblk, lk, proj)
    s = lax.dot_general(Qb, Kb,
                        dimension_numbers=(((2,), (2,)), ((0,), (0,))),
                        preferred_element_type=jnp.float32)

    # Lane-dense full-tile store (Lk padded to a multiple of 128 in the wrapper).
    out_ref[...] = (s + mask_ref[...]).astype(out_ref.dtype)


def attention_weights_forward(query, keys, wq, bq, wk, bk, num_heads,
                              attn_mask=None):
    """Pallas forward for MultiHeadAttentionWeightsOnly.

    query: (B, Lq, q_dim) or (Lq, q_dim)
    keys:  (B, Lk, k_dim) or (Lk, k_dim)
    wq: (q_dim, proj_dim), bq: (proj_dim,)   (transposed vs. PyTorch Linear)
    wk: (k_dim, proj_dim), bk: (proj_dim,)
    attn_mask: optional (B, Lk) of {0,1}
    returns: (B, Lq, Lk) fp32, squeezed to (Lq, Lk) if both inputs were 2-D.
    """
    single_query = query.ndim == 2
    single_key = keys.ndim == 2
    if single_query:
        query = query[None]
    if single_key:
        keys = keys[None]

    B, Lq, q_dim = query.shape
    Bk, Lk, k_dim = keys.shape
    assert Bk == B, "query/key batch mismatch"
    proj_dim = wq.shape[1]
    assert proj_dim % num_heads == 0
    head_dim = proj_dim // num_heads
    scale = 1.0 / (num_heads * (head_dim ** 0.5))

    # Sublane/lane-friendly padding; output last dim becomes a multiple of 128
    # so stores are full-lane unmasked vst.
    Lq_pad = _round_up(Lq, 8)
    Lk_pad = _round_up(Lk, 128)

    q_isz = jnp.dtype(query.dtype).itemsize
    k_isz = jnp.dtype(keys.dtype).itemsize

    def step_bytes(bb):
        # Double-buffered in/out tiles + weights + fp32/bf16 intermediates.
        in_q = 2 * bb * Lq_pad * q_dim * q_isz
        in_k = 2 * bb * Lk_pad * k_dim * k_isz
        msk = 2 * bb * 8 * Lk_pad * 4
        outb = 2 * bb * Lq_pad * Lk_pad * 4
        wgt = 2 * ((q_dim + k_dim) * proj_dim * 2 + 2 * 8 * proj_dim * 4)
        interm = bb * (Lq_pad + Lk_pad) * proj_dim * 6 + bb * Lq_pad * Lk_pad * 4
        return in_q + in_k + msk + outb + wgt + interm

    vmem_limit = _vmem_limit_bytes()
    Bblk = _choose_bblk(B, step_bytes, int(vmem_limit * 0.7), Lq_pad)
    nb = -(-B // Bblk)                  # cdiv
    B_pad = nb * Bblk

    # Pad only when the shapes require it (padding is an extra HBM pass over
    # the activations); inputs keep their native dtype (cast to bf16 in-kernel).
    if (B_pad, Lq_pad) != (B, Lq):
        qp = jnp.zeros((B_pad, Lq_pad, q_dim), query.dtype).at[:B, :Lq, :].set(query)
    else:
        qp = query
    if (B_pad, Lk_pad) != (B, Lk):
        kp = jnp.zeros((B_pad, Lk_pad, k_dim), keys.dtype).at[:B, :Lk, :].set(keys)
    else:
        kp = keys

    # Precompute the additive mask in the wrapper (one tiny XLA op):
    # 0 where attended, -1e9 where masked, 0 in padded columns/batches
    # (padded output is sliced away below).
    if attn_mask is None:
        add_mask = jnp.zeros((B_pad, 1, Lk_pad), jnp.float32)
    else:
        neg = (1.0 - attn_mask.astype(jnp.float32).reshape(B, Lk)) * (-1.0e9)
        add_mask = jnp.zeros((B_pad, 1, Lk_pad), jnp.float32).at[:B, 0, :Lk].set(neg)

    # Fold the attention scale into the query projection (fp32 math, bf16 weights).
    wq_s = (wq.astype(jnp.float32) * scale).astype(jnp.bfloat16)
    bq_s = (bq.astype(jnp.float32) * scale).reshape(1, proj_dim)
    wk_b = wk.astype(jnp.bfloat16)
    bk_f = bk.astype(jnp.float32).reshape(1, proj_dim)

    out = pl.pallas_call(
        _attn_weights_kernel,
        out_shape=jax.ShapeDtypeStruct((B_pad, Lq_pad, Lk_pad), jnp.float32),
        grid_spec=pltpu.PrefetchScalarGridSpec(
            num_scalar_prefetch=0,
            grid=(nb,),
            in_specs=[
                pl.BlockSpec((Bblk, Lq_pad, q_dim), lambda b: (b, 0, 0)),
                pl.BlockSpec((Bblk, Lk_pad, k_dim), lambda b: (b, 0, 0)),
                pl.BlockSpec((q_dim, proj_dim), lambda b: (0, 0)),
                pl.BlockSpec((1, proj_dim), lambda b: (0, 0)),
                pl.BlockSpec((k_dim, proj_dim), lambda b: (0, 0)),
                pl.BlockSpec((1, proj_dim), lambda b: (0, 0)),
                pl.BlockSpec((Bblk, 1, Lk_pad), lambda b: (b, 0, 0)),
            ],
            out_specs=pl.BlockSpec((Bblk, Lq_pad, Lk_pad), lambda b: (b, 0, 0)),
        ),
        compiler_params=pltpu.CompilerParams(
            dimension_semantics=("parallel",),
            vmem_limit_bytes=vmem_limit),
    )(qp, kp, wq_s, bq_s, wk_b, bk_f, add_mask)

    out = out[:B, :Lq, :Lk]
    if single_query and single_key:
        out = out[0]
    return out


def _reference_forward(query, keys, wq, bq, wk, bk, num_heads, attn_mask=None):
    # Pure-JAX fp32 reference mirroring the PyTorch code (per-head then mean).
    if query.ndim == 2:
        query = query[None]
    if keys.ndim == 2:
        keys = keys[None]
    B, Lq, _ = query.shape
    _, Lk, _ = keys.shape
    proj = wq.shape[1]
    hd = proj // num_heads
    Q = query @ wq + bq
    K = keys @ wk + bk
    Qh = Q.reshape(B, Lq, num_heads, hd).transpose(0, 2, 1, 3)
    Kh = K.reshape(B, Lk, num_heads, hd).transpose(0, 2, 1, 3)
    w = jnp.einsum("bhqd,bhkd->bhqk", Qh, Kh) / (hd ** 0.5)
    w = w.mean(axis=1)
    if attn_mask is not None:
        w = w + (1.0 - attn_mask)[:, None, :] * (-1.0e9)
    return w


if __name__ == "__main__":
    # Small shapes consistent with the module.
    B, Lq, Lk = 2, 8, 8
    state_dim, rule_dim, hidden_dim, num_heads = 16, 12, 32, 8

    key = jax.random.PRNGKey(0)
    k1, k2, k3, k4, k5, k6, k7 = jax.random.split(key, 7)

    query = jax.random.normal(k1, (B, Lq, state_dim), dtype=jnp.float32)
    keys = jax.random.normal(k2, (B, Lk, rule_dim), dtype=jnp.float32)
    # Parameters stored as (in, out), i.e. PyTorch W^T.
    wq = jax.random.normal(k3, (state_dim, hidden_dim), dtype=jnp.float32) * 0.1
    bq = jax.random.normal(k4, (hidden_dim,), dtype=jnp.float32) * 0.1
    wk = jax.random.normal(k5, (rule_dim, hidden_dim), dtype=jnp.float32) * 0.1
    bk = jax.random.normal(k6, (hidden_dim,), dtype=jnp.float32) * 0.1
    attn_mask = (jax.random.uniform(k7, (B, Lk)) > 0.3).astype(jnp.float32)

    out = attention_weights_forward(query, keys, wq, bq, wk, bk,
                                    num_heads, attn_mask=attn_mask)
    out = jax.block_until_ready(out)

    ref = _reference_forward(query, keys, wq, bq, wk, bk,
                             num_heads, attn_mask=attn_mask)
    assert out.shape == (B, Lq, Lk)
    # bf16 MXU operands with fp32 accumulation -> loosened tolerance vs fp32 ref.
    assert jnp.allclose(out, ref, atol=2e-2, rtol=2e-2), "mismatch vs reference"

    # Also exercise the 2-D (single query/key) path (no mask).
    out2 = attention_weights_forward(query[0], keys[0], wq, bq, wk, bk, num_heads)
    out2 = jax.block_until_ready(out2)
    ref2 = _reference_forward(query[0], keys[0], wq, bq, wk, bk, num_heads)[0]
    assert out2.shape == (Lq, Lk)
    assert jnp.allclose(out2, ref2, atol=2e-2, rtol=2e-2), "mismatch (2-D path)"

    # TODO(synk): dropout (p=0.0 / eval) is identity and is intentionally omitted.
    print("KERNEL_OK")
</pallas_src>

<mosaic_0001>
module attributes {stable_mosaic.version = 11 : i64} {
  func.func @_attn_weights_kernel(%arg0: i32, %arg1: memref<1x8x16xf32, #tpu.memory_space<vmem>>, %arg2: memref<1x128x12xf32, #tpu.memory_space<vmem>>, %arg3: memref<16x32xbf16, #tpu.memory_space<vmem>>, %arg4: memref<1x32xf32, #tpu.memory_space<vmem>>, %arg5: memref<12x32xbf16, #tpu.memory_space<vmem>>, %arg6: memref<1x32xf32, #tpu.memory_space<vmem>>, %arg7: memref<1x1x128xf32, #tpu.memory_space<vmem>>, %arg8: memref<1x8x128xf32, #tpu.memory_space<vmem>>) attributes {dimension_semantics = [#tpu.dimension_semantics<parallel>], iteration_bounds = array<i64: 2>, scalar_prefetch = 0 : i64, scratch_operands = 0 : i64, tpu.core_type = #tpu.core_type<tc>, window_params = [{transform_indices = @transform_0, window_bounds = array<i64: 1, 8, 16>}, {transform_indices = @transform_1, window_bounds = array<i64: 1, 128, 12>}, {pipeline_mode = #tpu.pipeline_mode<synchronous>, transform_indices = @transform_2, window_bounds = array<i64: 16, 32>}, {pipeline_mode = #tpu.pipeline_mode<synchronous>, transform_indices = @transform_3, window_bounds = array<i64: 1, 32>}, {pipeline_mode = #tpu.pipeline_mode<synchronous>, transform_indices = @transform_4, window_bounds = array<i64: 12, 32>}, {pipeline_mode = #tpu.pipeline_mode<synchronous>, transform_indices = @transform_5, window_bounds = array<i64: 1, 32>}, {transform_indices = @transform_6, window_bounds = array<i64: 1, 1, 128>}, {transform_indices = @transform_7, window_bounds = array<i64: 1, 8, 128>}]} {
    %c0 = arith.constant 0 : index
    %c0_0 = arith.constant 0 : index
    %c0_1 = arith.constant 0 : index
    %0 = vector.load %arg1[%c0, %c0_0, %c0_1] : memref<1x8x16xf32, #tpu.memory_space<vmem>>, vector<1x8x16xf32>
    %1 = vector.shape_cast %0 : vector<1x8x16xf32> to vector<8x16xf32>
    %2 = arith.truncf %1 : vector<8x16xf32> to vector<8x16xbf16>
    %c0_2 = arith.constant 0 : index
    %c0_3 = arith.constant 0 : index
    %c0_4 = arith.constant 0 : index
    %3 = vector.load %arg2[%c0_2, %c0_3, %c0_4] : memref<1x128x12xf32, #tpu.memory_space<vmem>>, vector<1x128x12xf32>
    %4 = vector.shape_cast %3 : vector<1x128x12xf32> to vector<128x12xf32>
    %5 = arith.truncf %4 : vector<128x12xf32> to vector<128x12xbf16>
    %c0_5 = arith.constant 0 : index
    %c0_6 = arith.constant 0 : index
    %6 = vector.load %arg3[%c0_5, %c0_6] : memref<16x32xbf16, #tpu.memory_space<vmem>>, vector<16x32xbf16>
    %cst = arith.constant dense<0.000000e+00> : vector<8x32xf32>
    %7 = tpu.matmul %2, %6, %cst {dimension_numbers = #tpu.dot_dimension_numbers<[1], [0], [0], [1], [0, 0, 1, 1], [], []>} : vector<8x16xbf16>, vector<16x32xbf16>, vector<8x32xf32> -> vector<8x32xf32>
    %c0_7 = arith.constant 0 : index
    %c0_8 = arith.constant 0 : index
    %8 = vector.load %arg4[%c0_7, %c0_8] : memref<1x32xf32, #tpu.memory_space<vmem>>, vector<1x32xf32>
    %9 = vector.broadcast %8 : vector<1x32xf32> to vector<8x32xf32>
    %10 = arith.addf %7, %9 : vector<8x32xf32>
    %c0_9 = arith.constant 0 : index
    %c0_10 = arith.constant 0 : index
    %11 = vector.load %arg5[%c0_9, %c0_10] : memref<12x32xbf16, #tpu.memory_space<vmem>>, vector<12x32xbf16>
    %cst_11 = arith.constant dense<0.000000e+00> : vector<128x32xf32>
    %12 = tpu.matmul %5, %11, %cst_11 {dimension_numbers = #tpu.dot_dimension_numbers<[1], [0], [0], [1], [0, 0, 1, 1], [], []>} : vector<128x12xbf16>, vector<12x32xbf16>, vector<128x32xf32> -> vector<128x32xf32>
    %c0_12 = arith.constant 0 : index
    %c0_13 = arith.constant 0 : index
    %13 = vector.load %arg6[%c0_12, %c0_13] : memref<1x32xf32, #tpu.memory_space<vmem>>, vector<1x32xf32>
    %14 = vector.broadcast %13 : vector<1x32xf32> to vector<128x32xf32>
    %15 = arith.addf %12, %14 : vector<128x32xf32>
    %16 = arith.truncf %10 : vector<8x32xf32> to vector<8x32xbf16>
    %17 = vector.shape_cast %16 : vector<8x32xbf16> to vector<1x8x32xbf16>
    %18 = arith.truncf %15 : vector<128x32xf32> to vector<128x32xbf16>
    %19 = vector.shape_cast %18 : vector<128x32xbf16> to vector<1x128x32xbf16>
    %cst_14 = arith.constant dense<0.000000e+00> : vector<1x8x128xf32>
    %20 = tpu.matmul %17, %19, %cst_14 {dimension_numbers = #tpu.dot_dimension_numbers<[2], [2], [1], [1], [0, 0, 0, 1, 1, 1], [0], [0]>} : vector<1x8x32xbf16>, vector<1x128x32xbf16>, vector<1x8x128xf32> -> vector<1x8x128xf32>
    %c0_15 = arith.constant 0 : index
    %c0_16 = arith.constant 0 : index
    %c0_17 = arith.constant 0 : index
    %21 = vector.load %arg7[%c0_15, %c0_16, %c0_17] : memref<1x1x128xf32, #tpu.memory_space<vmem>>, vector<1x1x128xf32>
    %22 = vector.broadcast %21 : vector<1x1x128xf32> to vector<1x8x128xf32>
    %23 = arith.addf %20, %22 : vector<1x8x128xf32>
    %c0_18 = arith.constant 0 : index
    %c0_19 = arith.constant 0 : index
    %c0_20 = arith.constant 0 : index
    %24 = vector.load %arg8[%c0_18, %c0_19, %c0_20] : memref<1x8x128xf32, #tpu.memory_space<vmem>>, vector<1x8x128xf32>
    tpu.vector_store %arg8[%c0_18, %c0_19, %c0_20], %23 {strides = array<i32>} : memref<1x8x128xf32, #tpu.memory_space<vmem>>, vector<1x8x128xf32>,
    return
  }
  func.func @transform_0(%arg0: i32) -> (i32, i32, i32) {
    %c0_i32 = arith.constant 0 : i32
    %c0_i32_0 = arith.constant 0 : i32
    %c0_i32_1 = arith.constant 0 : i32
    return %arg0, %c0_i32, %c0_i32_0 : i32, i32, i32
  }
  func.func @transform_1(%arg0: i32) -> (i32, i32, i32) {
    %c0_i32 = arith.constant 0 : i32
    %c0_i32_0 = arith.constant 0 : i32
    %c0_i32_1 = arith.constant 0 : i32
    return %arg0, %c0_i32, %c0_i32_0 : i32, i32, i32
  }
  func.func @transform_2(%arg0: i32) -> (i32, i32) {
    %c0_i32 = arith.constant 0 : i32
    %c0_i32_0 = arith.constant 0 : i32
    %c0_i32_1 = arith.constant 0 : i32
    return %c0_i32, %c0_i32_0 : i32, i32
  }
  func.func @transform_3(%arg0: i32) -> (i32, i32) {
    %c0_i32 = arith.constant 0 : i32
    %c0_i32_0 = arith.constant 0 : i32
    %c0_i32_1 = arith.constant 0 : i32
    return %c0_i32, %c0_i32_0 : i32, i32
  }
  func.func @transform_4(%arg0: i32) -> (i32, i32) {
    %c0_i32 = arith.constant 0 : i32
    %c0_i32_0 = arith.constant 0 : i32
    %c0_i32_1 = arith.constant 0 : i32
    return %c0_i32, %c0_i32_0 : i32, i32
  }
  func.func @transform_5(%arg0: i32) -> (i32, i32) {
    %c0_i32 = arith.constant 0 : i32
    %c0_i32_0 = arith.constant 0 : i32
    %c0_i32_1 = arith.constant 0 : i32
    return %c0_i32, %c0_i32_0 : i32, i32
  }
  func.func @transform_6(%arg0: i32) -> (i32, i32, i32) {
    %c0_i32 = arith.constant 0 : i32
    %c0_i32_0 = arith.constant 0 : i32
    %c0_i32_1 = arith.constant 0 : i32
    return %arg0, %c0_i32, %c0_i32_0 : i32, i32, i32
  }
  func.func @transform_7(%arg0: i32) -> (i32, i32, i32) {
    %c0_i32 = arith.constant 0 : i32
    %c0_i32_0 = arith.constant 0 : i32
    %c0_i32_1 = arith.constant 0 : i32
    return %arg0, %c0_i32, %c0_i32_0 : i32, i32, i32
  }
}

</mosaic_0001>

<bundles_post_ra>
// kernel: tpu_custom_call.1
= control target key start
LH: loop header
LB: loop body
LE: loop exit
PB: predicated region body
PF: predicated region fallthrough
CT: control target
= control target key end

     0   :  { %s1010_s0 = inlined_call_operand.vmem [shape: f32[2,8,16], index: 0, kind: input, shape index: {}]   ;;  %s1011_s1 = inlined_call_operand.vmem [shape: f32[2,128,12], index: 1, kind: input, shape index: {}]   ;;  %s1012_s2 = inlined_call_operand.vmem [shape: bf16[16,32], index: 2, kind: input, shape index: {}]   ;;  %s1013_s3 = inlined_call_operand.vmem [shape: f32[1,32], index: 3, kind: input, shape index: {}]   ;;  %s1014_s4 = inlined_call_operand.vmem [shape: bf16[12,32], index: 4, kind: input, shape index: {}]   ;;  %s1015_s5 = inlined_call_operand.vmem [shape: f32[1,32], index: 5, kind: input, shape index: {}]   ;;  %s1016_s6 = inlined_call_operand.vmem [shape: f32[2,1,128], index: 6, kind: input, shape index: {}]   ;;  %s1017_s7 = inlined_call_operand.hbm [shape: f32[2,8,128], index: 7, kind: output, shape index: {}]  }
   0x1   :  { %1018 = sst [smem:[#allocation5_spill]] %s1010_s0 }
   0x2   :  { %12 = vsyncpa [#allocation3], 0 }
   0x3   :  { %14 = vsyncpa [#allocation3 + $0x1], 0  ;;  %s832_s24 = smov 0   ;;  %s834_s25 = smov 0  }
   0x4   :  { %s836_s26 = smov 0   ;;  %s838_s27 = smov 0  }
   0x5 LB: > { %s853_s28 = sadd.s32 4294967295, %s790_s27   ;;  %s652_s29 = sadd.s32 4294967294, %s790_s27   ;;  %s790_s27 = sphi %s838_s27, %s1025_s27   ;;  %s786_s26 = sphi %s836_s26, %s1024_s26   ;;  %s782_s25 = sphi %s834_s25, %s1023_s25   ;;  %s778_s24 = sphi %s832_s24, %s1022_s24  }
   0x6   : > { %s857_s30 = sadd.s32 1, %s790_s27   ;;  %s189_s8 = sadd.s32 1, %s786_s26 }
   0x7   : > { %s186_s9 = ssub.s32 %s790_s27, %s857_s30  ;;  %p199_p0 = scmp.ne.s32.totalorder %s786_s26, %s782_s25 }
   0x8   : > { %p187_p1 = scmp.eq.s32.totalorder %s186_s9, 0  ;;  %p200_p2 = scmp.eq.s32.totalorder %s853_s28, 1 }
   0x9   : > { %p205_p3 = scmp.ne.s32.totalorder %s782_s25, %s778_s24  ;;  %p206_p4 = scmp.eq.s32.totalorder %s652_s29, 1 }
   0xa   : > { %s868_s10 = scalar_select %p187_p1, %s786_s26, %s189_s8  }
   0xb   : > { %p870_p5 = por %p200_p2, %p199_p0  ;;  %p874_p6 = por %p206_p4, %p205_p3 }
   0xc   : > { %p655_p7 = scmp.ge.s32.totalorder %s790_s27, 1  ;;  %p257_p8 = scmp.lt.s32.totalorder %s790_s27, 3 }
   0xe   : > { %p258_p9 = pnand %p655_p7, %p257_p8 }
   0xf   : > { %p296_p10 = scmp.lt.s32.totalorder (!%p258_p9), %s853_s28, 1  ;;  %s1021_s0 = sld [smem:[#allocation5_spill]] (!%p258_p9) }
  0x10   : > { %261 = sbr.rel (%p258_p9) target bundleno = 428 (0x1ac), region = 48  ;;  %s679_s23 = sshll.u32 (!%p258_p9), %s853_s28, 3 }
  0x11   : > { %s567_s13 = scalar_lea.hbm (!%p258_p9), %s1017_s7, %s679_s23 }
  0x12   : > { %s571_s20 = sshll.u32 (!%p258_p9), %s567_s13, 4  ;;  %s572_s20 = int_to_ptr.hbm [resolvable:$true] %s571_s20 }
  0x15   : > { %v667_v0 = vld [vmem:[%s1014_s4] sm:$0xf]  ;;  %v684_v1 = vld [vmem:[%s1014_s4] sm:$0x30]  ;;  %vm400_vm0 = vcmask 1045504   ;;  %s888_s17 = scalar_select %p296_p10, %s853_s28, 1 }
  0x16   : > { %v668_v2 = vor.u32 %v684_v1, %v667_v0  ;;  %vm375_vm1 = vcmask 97280   ;;  %v683_v16 = vld [vmem:[%s1012_s2] sm:$0xff]  ;;  %vm347_vm2 = vcmask 130048   ;;  %vm514_vm3 = vcmask 261120  }
  0x17   : > { %s682_s18 = sshll.u32 %s888_s17, 7  ;;  %s657_s22 = sshll.u32 %s888_s17, 3  ;;  %358 = vmatpush.bf16.msra.mxu0 %v683_v16  ;;  %v930_v32 = vld [vmem:[%s1015_s5] ss:$0 sm:$0xff] }
  0x18   : > { %v402_v3 = vsel %vm400_vm0, %v668_v2, 0  ;;  %s894_s21 = scalar_lea.vmem %s1011_s1, %s682_s18  ;;  %s299_s8 = scalar_lea.vmem %s1021_s0, %s657_s22 }
  0x19   : > { %685 = vmatpush.bf16.msra.mxu3 %v402_v3  ;;  %411 = vmatpush.bf16.msra.mxu1 %v402_v3  ;;  %v319_v4 = vld [vmem:[%s894_s21 + $0x40] sm:$0xff]  ;;  %v320_v5 = vld [vmem:[%s894_s21 + $0x48] sm:$0xff]  ;;  %v321_v10 = vld [vmem:[%s894_s21 + $0x50] sm:$0xff]  ;;  %s307_s19 = scalar_lea.vmem %s1016_s6, %s888_s17  ;;  %s293_s22 = sand.u32 1, %s782_s25  }
  0x1a   : > { %v331_v6 = vpack.c.bf16 %v320_v5, %v319_v4  ;;  %v311_v7 = vld [vmem:[%s894_s21] sm:$0xff]  ;;  %v312_v8 = vld [vmem:[%s894_s21 + $0x8] sm:$0xff]  ;;  %v322_v11 = vld [vmem:[%s894_s21 + $0x58] sm:$0xff]  ;;  %s656_s29 = sshll.u32 %s293_s22, 3  ;;  %s557_s28 = scalar_lea.sflag [#allocation3], %s293_s22 }
  0x1b   : > { %v327_v9 = vpack.c.bf16 %v312_v8, %v311_v7  ;;  %v313_v12 = vld [vmem:[%s894_s21 + $0x10] sm:$0xff]  ;;  %v314_v13 = vld [vmem:[%s894_s21 + $0x18] sm:$0xff]  ;;  %v332_v14 = vpack.c.bf16 %v322_v11, %v321_v10  ;;  %v309_v17 = vld [vmem:[%s299_s8] sm:$0xff]  ;;  %s295_s16 = scalar_lea.vmem [#allocation2], %s656_s29  ;;  %s748_s17 = scalar_lea.hbm %s1017_s7, 16 }
  0x1c   : > { %673 = vmatmul.msk.bf16.vlgmr.msra.gmra.mxu3 %vm375_vm1, %v331_v6  ;;  %v328_v15 = vpack.c.bf16 %v314_v13, %v313_v12  ;;  %v310_v18 = vpack.c.bf16 %v309_v17, %v309_v17  ;;  %v323_v19 = vld [vmem:[%s894_s21 + $0x60] sm:$0xff]  ;;  %v324_v20 = vld [vmem:[%s894_s21 + $0x68] sm:$0xff]  ;;  %v325_v25 = vld [vmem:[%s894_s21 + $0x70] sm:$0xff]  ;;  %s569_s18 = sshll.u32 %s295_s16, 4  ;;  %s570_s18 = int_to_ptr.vmem [resolvable:$true] %s569_s18 }
  0x1d   : > { %669 = vmatmul.msk.bf16.vlgmr.msra.gmra.mxu1 %vm375_vm1, %v327_v9  ;;  %v315_v21 = vld [vmem:[%s894_s21 + $0x20] sm:$0xff]  ;;  %v316_v22 = vld [vmem:[%s894_s21 + $0x28] sm:$0xff]  ;;  %v333_v23 = vpack.c.bf16 %v324_v20, %v323_v19  ;;  %v326_v26 = vld [vmem:[%s894_s21 + $0x78] sm:$0xff] }
  0x1e   : > { %664 = vmatmul.msk.bf16.vlgmr.msra.gmra.mxu0 %vm347_vm2, %v310_v18  ;;  %v329_v24 = vpack.c.bf16 %v316_v22, %v315_v21  ;;  %v317_v27 = vld [vmem:[%s894_s21 + $0x30] sm:$0xff]  ;;  %v318_v28 = vld [vmem:[%s894_s21 + $0x38] sm:$0xff]  ;;  %v334_v29 = vpack.c.bf16 %v326_v26, %v325_v25  ;;  %s742_s21 = sshra.s32 %s572_s20, 4  ;;  %s743_s21 = int_to_ptr.hbm [resolvable:$true] %s742_s21 }
  0x1f   : > { %v330_v30 = vpack.c.bf16 %v318_v28, %v317_v27  ;;  %s744_s0 = scalar_lea.hbm %s743_s21, 8  ;;  %p749_p0 = scmp.lt.s32.totalorder %s743_s21, %s1017_s7 }
  0x20   : > { %p745_p11 = scmp.ne.s32.totalorder %s743_s21, %s744_s0  ;;  %p750_p1 = scmp.lt.s32.totalorder %s748_s17, %s744_s0 }
  0x22   : > { %p746_p12 = pnand %p745_p11, %p870_p5  ;;  %p751_p2 = por %p750_p1, %p749_p0 }
  0x24   : > { %p747_p13 = pneg %p746_p12 }
  0x26   : > { %p752_p3 = pnand %p751_p2, %p747_p13 }
  0x2c   : > { %674 = vmatmul.msk.bf16.gmra.mxu3 %vm375_vm1, %v332_v14 }
  0x2d   : > { %670 = vmatmul.msk.bf16.gmra.mxu1 %vm375_vm1, %v328_v15 }
  0x3c   : > { %675 = vmatmul.msk.bf16.gmra.mxu3 %vm375_vm1, %v333_v23 }
  0x3d   : > { %671 = vmatmul.msk.bf16.gmra.mxu1 %vm375_vm1, %v329_v24 }
  0x4c   : > { %676 = vmatmul.msk.bf16.gmra.mxu3 %vm375_vm1, %v334_v29 }
  0x4d   : > { %672 = vmatmul.msk.bf16.gmra.mxu1 %vm375_vm1, %v330_v30 }
  0x9a   : > { %v413_v31 = vpop.f32.mrf.mxu1 }
  0x9b   : > { %v414_v33 = vadd.f32 %v930_v32, %v413_v31  ;;  %v360_v24 = vpop.f32.mrf.mxu0 }
  0x9d   : > { %v454_v35 = vpack.c.bf16 %v414_v33, %v414_v33 }
  0x9f   : > { %v433_v34 = vpop.f32.mrf.mxu3  ;;  %v939_v39 = vunpack.c.l.b16 %v454_v35 }
  0xa0   : > { %v434_v38 = vadd.f32 %v930_v32, %v433_v34 }
  0xa2   : > { %v415_v36 = vpop.f32.mrf.mxu1  ;;  %v462_v43 = vpack.c.bf16 %v434_v38, %v434_v38 }
  0xa3   : > { %v416_v37 = vadd.f32 %v930_v32, %v415_v36  ;;  %v362_v33 = vpop.f32.mrf.mxu0 }
  0xa4   : > { %v498_v47 = vunpack.c.l.b16 %v462_v43 }
  0xa5   : > { %v455_v40 = vpack.c.bf16 %v416_v37, %v416_v37 }
  0xa7   : > { %v435_v41 = vpop.f32.mrf.mxu3  ;;  %v941_v42 = vunpack.c.l.b16 %v455_v40 }
  0xa8   : > { %v436_v44 = vadd.f32 %v930_v32, %v435_v41 }
  0xa9   : > { %v506_v45 = vpack.c.b16 %v941_v42, %v939_v39 }
  0xaa   : > { %v463_v46 = vpack.c.bf16 %v436_v44, %v436_v44  ;;  %v418_v52 = vpop.f32.mrf.mxu1 }
  0xab   : > { %v419_v37 = vadd.f32 %v930_v32, %v418_v52 }
  0xac   : > { %v499_v48 = vunpack.c.l.b16 %v463_v46 }
  0xad   : > { %v456_v44 = vpack.c.bf16 %v419_v37, %v419_v37 }
  0xae   : > { %v510_v49 = vpack.c.b16 %v499_v48, %v498_v47 }
  0xaf   : > { %v438_v50 = vpop.f32.mrf.mxu3  ;;  %v492_v48 = vunpack.c.l.b16 %v456_v44 }
  0xb0   : > { %v439_v10 = vadd.f32 %v930_v32, %v438_v50  ;;  %v531_v27 = vsel %vm514_vm3, %v510_v49, 0 }
  0xb2   : > { %v420_v54 = vpop.f32.mrf.mxu1  ;;  %v464_v15 = vpack.c.bf16 %v439_v10, %v439_v10 }
  0xb3   : > { %v421_v38 = vadd.f32 %v930_v32, %v420_v54  ;;  %v519_v54 = vsel %vm514_vm3, %v506_v45, 0 }
  0xb4   : > { %v500_v18 = vunpack.c.l.b16 %v464_v15 }
  0xb5   : > { %v457_v46 = vpack.c.bf16 %v421_v38, %v421_v38 }
  0xb7   : > { %v440_v51 = vpop.f32.mrf.mxu3  ;;  %v493_v49 = vunpack.c.l.b16 %v457_v46 }
  0xb8   : > { %v441_v7 = vadd.f32 %v930_v32, %v440_v51 }
  0xb9   : > { %v507_v51 = vpack.c.b16 %v493_v49, %v492_v48 }
  0xba   : > { %v423_v57 = vpop.f32.mrf.mxu1  ;;  %v465_v13 = vpack.c.bf16 %v441_v7, %v441_v7 }
  0xbb   : > { %v424_v28 = vadd.f32 %v930_v32, %v423_v57  ;;  %v522_v52 = vsel %vm514_vm3, %v507_v51, 0 }
  0xbc   : > { %v501_v16 = vunpack.c.l.b16 %v465_v13 }
  0xbd   : > { %v458_v34 = vpack.c.bf16 %v424_v28, %v424_v28 }
  0xbe   : > { %v511_v19 = vpack.c.b16 %v501_v16, %v500_v18 }
  0xbf   : > { %v443_v53 = vpop.f32.mrf.mxu3  ;;  %v494_v40 = vunpack.c.l.b16 %v458_v34 }
  0xc0   : > { %v444_v0 = vadd.f32 %v930_v32, %v443_v53  ;;  %v534_v23 = vsel %vm514_vm3, %v511_v19, 0 }
  0xc2   : > { %v425_v63 = vpop.f32.mrf.mxu1  ;;  %v466_v5 = vpack.c.bf16 %v444_v0, %v444_v0 }
  0xc3   : > { %v426_v29 = vadd.f32 %v930_v32, %v425_v63 }
  0xc4   : > { %v502_v11 = vunpack.c.l.b16 %v466_v5 }
  0xc5   : > { %v459_v35 = vpack.c.bf16 %v426_v29, %v426_v29 }
  0xc7   : > { %v445_v55 = vpop.f32.mrf.mxu3  ;;  %v495_v41 = vunpack.c.l.b16 %v459_v35 }
  0xc8   : > { %v446_v60 = vadd.f32 %v930_v32, %v445_v55 }
  0xc9   : > { %v508_v47 = vpack.c.b16 %v495_v41, %v494_v40 }
  0xca   : > { %v467_v2 = vpack.c.bf16 %v446_v60, %v446_v60  ;;  %v428_v12 = vpop.f32.mrf.mxu1 }
  0xcb   : > { %v429_v21 = vadd.f32 %v930_v32, %v428_v12  ;;  %v525_v50 = vsel %vm514_vm3, %v508_v47, 0 }
  0xcc   : > { %v503_v8 = vunpack.c.l.b16 %v467_v2 }
  0xcd   : > { %v460_v25 = vpack.c.bf16 %v429_v21, %v429_v21 }
  0xce   : > { %v512_v14 = vpack.c.b16 %v503_v8, %v502_v11 }
  0xcf   : > { %v448_v56 = vpop.f32.mrf.mxu3  ;;  %v496_v30 = vunpack.c.l.b16 %v460_v25 }
  0xd0   : > { %v449_v58 = vadd.f32 %v930_v32, %v448_v56  ;;  %v537_v17 = vsel %vm514_vm3, %v512_v14, 0  ;;  %v727_v56 = vld [vmem:[%s307_s19] ss:$0 sm:$0xff] }
  0xd2   : > { %v468_v61 = vpack.c.bf16 %v449_v58, %v449_v58  ;;  %v430_v20 = vpop.f32.mrf.mxu1 }
  0xd3   : > { %v431_v22 = vadd.f32 %v930_v32, %v430_v20 }
  0xd4   : > { %v504_v3 = vunpack.c.l.b16 %v468_v61 }
  0xd5   : > { %v461_v26 = vpack.c.bf16 %v431_v22, %v431_v22 }
  0xd7   : > { %v450_v59 = vpop.f32.mrf.mxu3  ;;  %v497_v31 = vunpack.c.l.b16 %v461_v26 }
  0xd8   : > { %v451_v62 = vadd.f32 %v930_v32, %v450_v59  ;;  %v726_v32 = vld [vmem:[%s1013_s3] ss:$0 sm:$0xff] }
  0xd9   : > { %v509_v36 = vpack.c.b16 %v497_v31, %v496_v30  ;;  %v361_v53 = vadd.f32 %v726_v32, %v360_v24 }
  0xda   : > { %v469_v1 = vpack.c.bf16 %v451_v62, %v451_v62 }
  0xdb   : > { %v528_v43 = vsel %vm514_vm3, %v509_v36, 0  ;;  %v453_v55 = vpack.c.bf16 %v361_v53, %v361_v53 }
  0xdc   : > { %v505_v4 = vunpack.c.l.b16 %v469_v1 }
  0xde   : > { %v513_v6 = vpack.c.b16 %v505_v4, %v504_v3 }
  0xe0   : > { %v540_v9 = vsel %vm514_vm3, %v513_v6, 0 }
  0xe1   : > { %542 = vmatpush.bf16.xpose.msra.mxu2 %v540_v9 }
  0xe9   : > { %543 = vmatpush.bf16.xpose.msra.mxu2 %v537_v17 }
  0xf1   : > { %544 = vmatpush.bf16.xpose.msra.mxu2 %v534_v23 }
  0xf9   : > { %545 = vmatpush.bf16.xpose.msra.mxu2 %v531_v27 }
 0x101   : > { %546 = vmatpush.bf16.xpose.msra.mxu2 %v528_v43 }
 0x109   : > { %547 = vmatpush.bf16.xpose.msra.mxu2 %v525_v50 }
 0x111   : > { %548 = vmatpush.bf16.xpose.msra.mxu2 %v522_v52 }
 0x119   : > { %549 = vmatpush.bf16.xpose.msra.mxu2 %v519_v54 }
 0x120   : > { %677 = vmatmul.msk.bf16.vlgmr.msra.gmra.mxu2 %vm514_vm3, %v453_v55 }
 0x1a3   : > { %v551_v39 = vpop.f32.mrf.mxu2 }
 0x1a4   : > { %v552_v42 = vadd.f32 %v727_v56, %v551_v39 }
 0x1a6   : > { %555 = vst [vmem:[%s295_s16] sm:$0xff] %v552_v42 }
 0x1a7   : > { %755 = shalt.err (!%p752_p3)
}
 0x1a8   : > { %686 = dma.vmem_to_hbm [thread:$0]  (%p870_p5), %s570_s18, 128, %s572_s20, %s557_s28  }
 0x1ab   : > { %v553_v45 = vpop.f32.mrf.mxu2 }
 0x1ac PF: > { %p692_p4 = scmp.ge.s32.totalorder %s790_s27, 2  ;;  %s583_s22 = sand.u32 1, %s778_s24  }
 0x1ad   : > { %s584_s9 = scalar_lea.sflag [#allocation3], %s583_s22 }
 0x1ae   : > { %p689_p7 = pnand %p692_p4, %p874_p6 }
 0x1b0   : > { %p690_p8 = pneg %p689_p7 }
 0x1b2   : > { %773 = dma.done.wait (%p690_p8), %s584_s9, 128  }
 0x1b3   : > { %775 = vsyncadd (%p690_p8), %s584_s9, 4294967168  ;;  %p17_p9 = scmp.ge.s32.totalorder %s857_s30, 4   ;;  %s1022_s24 = smov %s782_s25 }
 0x1b4   : > { %s1023_s25 = smov %s786_s26  ;;  %s1024_s26 = smov %s868_s10 }
 0x1b5   : > { %s1025_s27 = smov %s857_s30  ;;  %19 = sbr.rel (!%p17_p9) target bundleno = 5 (0x5), region = 89 }
 0x1ba   :  { %590 = vsyncpa [#allocation3], 1 }
 0x1bb   :  { %592 = vsyncpa [#allocation3 + $0x1], 1 }

</bundles_post_ra>
